<compile_context>
chip_gen: v7x
topology: tpu7x:2x2x1
jax: 0.10.0
libtpu: 0.0.40
codegen_flags: <defaults>
</compile_context>

<pallas_src>
import functools

import jax
import jax.numpy as jnp
import numpy as np
from jax.experimental import pallas as pl
from jax.experimental.pallas import tpu as pltpu

_LANES = 128
_SUBLANES = 8
_TARGET_BLOCK_BYTES = 2 * 1024 * 1024  # per-input, per-buffer VMEM footprint target


def _round_up(x, m):
    return ((x + m - 1) // m) * m


def _bce_sum_kernel(pred_ref, gt_ref, out_ref, *, n_rows, block_rows):
    """Per-block partial sum of BCE-with-logits over a (block_rows, D) tile."""
    # Cast in-register (inputs may arrive as bf16); all math is f32.
    x = pred_ref[...].astype(jnp.float32)            # (block_rows, D)
    y = gt_ref[...].astype(jnp.float32)              # (block_rows, D) or (1, D)

    # Numerically-stable BCE-with-logits (PyTorch formulation):
    #   max(x, 0) - x*y + log1p(exp(-|x|))
    loss = jnp.maximum(x, 0.0) - x * y + jnp.log1p(jnp.exp(-jnp.abs(x)))

    i = pl.program_id(0)
    last = pl.num_programs(0) - 1

    @pl.when(i != last)
    def _():
        out_ref[...] = jnp.full(out_ref.shape, jnp.sum(loss), dtype=out_ref.dtype)

    @pl.when(i == last)
    def _():
        # Ragged tail: rows past n_rows hold unspecified data -> mask them out.
        row = jax.lax.broadcasted_iota(jnp.int32, loss.shape, 0) + i * block_rows
        masked = jnp.where(row < n_rows, loss, 0.0)
        out_ref[...] = jnp.full(out_ref.shape, jnp.sum(masked), dtype=out_ref.dtype)


def centerness_loss_pallas(center_pred, fg_mask, centerness_gt=1.0):
    """Pallas implementation of centernessloss.forward."""
    pred = jnp.asarray(center_pred)
    d = pred.shape[-1]
    pred2d = pred.reshape(-1, d)                     # free reshape, no HBM copy
    rows = pred2d.shape[0]

    gt = jnp.asarray(centerness_gt)
    if gt.shape == pred.shape:
        gt2d = gt.reshape(-1, d)                     # full-size target: use as-is
        gt_is_full = True
    else:
        # Scalar / per-ray target: keep it tiny; broadcast happens in-register inside
        # the kernel (same (1, D) block re-used every grid step).
        # TODO(synk): other broadcast patterns (e.g. (N, 1)) are not special-cased.
        gt2d = jnp.broadcast_to(gt.astype(jnp.float32), (1, d))
        gt_is_full = False

    # --- grid / block sizing: grid first, then balanced blocks ----------------------
    lanes_padded = _round_up(d, _LANES)              # VMEM tile lane padding
    itemsize = pred2d.dtype.itemsize
    max_block_rows = max(
        _SUBLANES,
        (_TARGET_BLOCK_BYTES // (lanes_padded * itemsize)) // _SUBLANES * _SUBLANES)

    grid = max(1, pl.cdiv(rows, max_block_rows))
    if rows >= 2 * _SUBLANES:
        grid = max(2, grid)                          # keep the DMA pipeline / v7x TCs busy
    block_rows = min(max_block_rows, _round_up(pl.cdiv(rows, grid), _SUBLANES))
    grid = pl.cdiv(rows, block_rows)                 # no fully out-of-bounds blocks

    if gt_is_full:
        gt_spec = pl.BlockSpec((block_rows, d), lambda i: (i, 0))
    else:
        gt_spec = pl.BlockSpec((1, d), lambda i: (0, 0))

    elems = rows * d
    kernel = functools.partial(_bce_sum_kernel, n_rows=rows, block_rows=block_rows)

    partials = pl.pallas_call(
        kernel,
        out_shape=jax.ShapeDtypeStruct((1, grid * _LANES), jnp.float32),
        grid=(grid,),
        in_specs=[pl.BlockSpec((block_rows, d), lambda i: (i, 0)),
                  gt_spec],
        out_specs=pl.BlockSpec((1, _LANES), lambda i: (0, i)),
        compiler_params=pltpu.CompilerParams(
            dimension_semantics=("parallel",),       # megacore split on v7x
            vmem_limit_bytes=32 * 1024 * 1024),
        cost_estimate=pl.CostEstimate(
            flops=5 * elems,
            transcendentals=2 * elems,               # exp + log1p per element
            bytes_accessed=(pred2d.size * itemsize
                            + gt2d.size * gt2d.dtype.itemsize
                            + grid * _LANES * 4)),
    )(pred2d, gt2d)

    # Tiny wrapper-side finalization (fused scalar XLA ops).
    # NOTE: dividing by fg_mask.sum() without clamping matches the PyTorch semantics
    # (inf/nan if the mask is empty).
    num = jnp.sum(fg_mask.astype(jnp.float32))
    total_loss = jnp.sum(partials.reshape(grid, _LANES)[:, 0])
    return total_loss / num


def centerness_loss_reference(center_pred, fg_mask, centerness_gt=1.0):
    """Pure-JAX mirror of the PyTorch forward."""
    num = jnp.sum(fg_mask.astype(jnp.float32))
    x = jnp.asarray(center_pred, jnp.float32)
    y = jnp.broadcast_to(jnp.asarray(centerness_gt, jnp.float32), x.shape)
    loss = jnp.maximum(x, 0.0) - x * y + jnp.log1p(jnp.exp(-jnp.abs(x)))
    return jnp.sum(loss) / num


if __name__ == "__main__":
    key = jax.random.PRNGKey(0)
    k1, k2 = jax.random.split(key)

    N, R = 64, 36                                    # nr_box, 36 rays per box
    center_pred = jax.random.normal(k1, (N, R), jnp.float32) * 2.0
    centerness_gt = jax.random.uniform(k2, (N, R), jnp.float32)   # targets in [0, 1]
    fg_mask = (jnp.arange(N) % 3) != 0               # deterministic bool mask, sum > 0

    loss = centerness_loss_pallas(center_pred, fg_mask, centerness_gt)
    jax.block_until_ready(loss)

    ref = centerness_loss_reference(center_pred, fg_mask, centerness_gt)
    np.testing.assert_allclose(np.asarray(loss), np.asarray(ref),
                               rtol=1e-4, atol=1e-5)
    print("KERNEL_OK")
</pallas_src>

<mosaic_0001>
module attributes {stable_mosaic.version = 11 : i64} {
  func.func @_bce_sum_kernel(%arg0: i32, %arg1: memref<32x36xf32, #tpu.memory_space<vmem>>, %arg2: memref<32x36xf32, #tpu.memory_space<vmem>>, %arg3: memref<1x128xf32, #tpu.memory_space<vmem>>) attributes {dimension_semantics = [#tpu.dimension_semantics<parallel>], iteration_bounds = array<i64: 2>, scalar_prefetch = 0 : i64, scratch_operands = 0 : i64, tpu.core_type = #tpu.core_type<tc>, window_params = [{transform_indices = @transform_0, window_bounds = array<i64: 32, 36>}, {transform_indices = @transform_1, window_bounds = array<i64: 32, 36>}, {transform_indices = @transform_2, window_bounds = array<i64: 1, 128>}]} {
    %c0 = arith.constant 0 : index
    %c0_0 = arith.constant 0 : index
    %0 = vector.load %arg1[%c0, %c0_0] : memref<32x36xf32, #tpu.memory_space<vmem>>, vector<32x36xf32>
    %c0_1 = arith.constant 0 : index
    %c0_2 = arith.constant 0 : index
    %1 = vector.load %arg2[%c0_1, %c0_2] : memref<32x36xf32, #tpu.memory_space<vmem>>, vector<32x36xf32>
    %cst = arith.constant 0.000000e+00 : f32
    %2 = vector.broadcast %cst : f32 to vector<32x36xf32>
    %3 = arith.maximumf %0, %2 : vector<32x36xf32>
    %4 = arith.mulf %0, %1 : vector<32x36xf32>
    %5 = arith.subf %3, %4 : vector<32x36xf32>
    %6 = math.absf %0 : vector<32x36xf32>
    %cst_3 = arith.constant 0.000000e+00 : f32
    %7 = vector.broadcast %cst_3 : f32 to vector<32x36xf32>
    %8 = arith.subf %7, %6 : vector<32x36xf32>
    %9 = math.exp %8 : vector<32x36xf32>
    %10 = math.log1p %9 : vector<32x36xf32>
    %11 = arith.addf %5, %10 : vector<32x36xf32>
    %c1_i32 = arith.constant 1 : i32
    %12 = arith.cmpi ne, %arg0, %c1_i32 : i32
    %13 = arith.extui %12 : i1 to i32
    %c0_i32 = arith.constant 0 : i32
    %14 = arith.cmpi ne, %13, %c0_i32 : i32
    scf.if %14 {
      %18 = vector.shape_cast %11 : vector<32x36xf32> to vector<1x32x36xf32>
      %cst_6 = arith.constant dense<0.000000e+00> : vector<1xf32>
      %19 = vector.multi_reduction <add>, %18, %cst_6 [1, 2] : vector<1x32x36xf32> to vector<1xf32>
      %20 = vector.shape_cast %19 : vector<1xf32> to vector<1x1x1xf32>
      %21 = vector.extract %20[0, 0, 0] : f32 from vector<1x1x1xf32>
      %22 = vector.broadcast %21 : f32 to vector<1x128xf32>
      %c0_7 = arith.constant 0 : index
      %c0_8 = arith.constant 0 : index
      %23 = vector.load %arg3[%c0_7, %c0_8] : memref<1x128xf32, #tpu.memory_space<vmem>>, vector<1x128xf32>
      tpu.vector_store %arg3[%c0_7, %c0_8], %22 {strides = array<i32>} : memref<1x128xf32, #tpu.memory_space<vmem>>, vector<1x128xf32>,
    } else {
    }
    %c1_i32_4 = arith.constant 1 : i32
    %15 = arith.cmpi eq, %arg0, %c1_i32_4 : i32
    %16 = arith.extui %15 : i1 to i32
    %c0_i32_5 = arith.constant 0 : i32
    %17 = arith.cmpi ne, %16, %c0_i32_5 : i32
    scf.if %17 {
      %18 = tpu.iota {dimensions = array<i32: 0>} : vector<32x36xi32>
      %c32_i32 = arith.constant 32 : i32
      %19 = arith.muli %arg0, %c32_i32 : i32
      %20 = vector.broadcast %19 : i32 to vector<32x36xi32>
      %21 = arith.addi %18, %20 : vector<32x36xi32>
      %c64_i32 = arith.constant 64 : i32
      %22 = vector.broadcast %c64_i32 : i32 to vector<32x36xi32>
      %23 = arith.cmpi slt, %21, %22 : vector<32x36xi32>
      %cst_6 = arith.constant 0.000000e+00 : f32
      %24 = vector.broadcast %cst_6 : f32 to vector<32x36xf32>
      %25 = arith.select %23, %11, %24 : vector<32x36xi1>, vector<32x36xf32>
      %26 = vector.shape_cast %25 : vector<32x36xf32> to vector<1x32x36xf32>
      %cst_7 = arith.constant dense<0.000000e+00> : vector<1xf32>
      %27 = vector.multi_reduction <add>, %26, %cst_7 [1, 2] : vector<1x32x36xf32> to vector<1xf32>
      %28 = vector.shape_cast %27 : vector<1xf32> to vector<1x1x1xf32>
      %29 = vector.extract %28[0, 0, 0] : f32 from vector<1x1x1xf32>
      %30 = vector.broadcast %29 : f32 to vector<1x128xf32>
      %c0_8 = arith.constant 0 : index
      %c0_9 = arith.constant 0 : index
      %31 = vector.load %arg3[%c0_8, %c0_9] : memref<1x128xf32, #tpu.memory_space<vmem>>, vector<1x128xf32>
      tpu.vector_store %arg3[%c0_8, %c0_9], %30 {strides = array<i32>} : memref<1x128xf32, #tpu.memory_space<vmem>>, vector<1x128xf32>,
    } else {
    }
    return
  }
  func.func @transform_0(%arg0: i32) -> (i32, i32) {
    %c0_i32 = arith.constant 0 : i32
    %c0_i32_0 = arith.constant 0 : i32
    return %arg0, %c0_i32 : i32, i32
  }
  func.func @transform_1(%arg0: i32) -> (i32, i32) {
    %c0_i32 = arith.constant 0 : i32
    %c0_i32_0 = arith.constant 0 : i32
    return %arg0, %c0_i32 : i32, i32
  }
  func.func @transform_2(%arg0: i32) -> (i32, i32) {
    %c0_i32 = arith.constant 0 : i32
    %c0_i32_0 = arith.constant 0 : i32
    return %c0_i32, %arg0 : i32, i32
  }
}

</mosaic_0001>

<bundles_post_ra>
// kernel: tpu_custom_call.1
= control target key start
LH: loop header
LB: loop body
LE: loop exit
PB: predicated region body
PF: predicated region fallthrough
CT: control target
= control target key end

     0   :  { %7 = vsyncpa [#allocation3], 0  ;;  %s684_s0 = inlined_call_operand.vmem [shape: f32[64,36], index: 0, kind: input, shape index: {}]   ;;  %s685_s1 = inlined_call_operand.vmem [shape: f32[64,36], index: 1, kind: input, shape index: {}]   ;;  %s686_s2 = inlined_call_operand.hbm [shape: f32[1,256], index: 2, kind: output, shape index: {}]  }
   0x1   :  { %9 = vsyncpa [#allocation3 + $0x1], 0  ;;  %s539_s9 = smov 0   ;;  %s541_s10 = smov 0  }
   0x2   :  { %s543_s11 = smov 0   ;;  %s545_s12 = smov 0  }
   0x3 LB: > { %s560_s13 = sadd.s32 4294967295, %s521_s12   ;;  %s386_s14 = sadd.s32 4294967294, %s521_s12   ;;  %s521_s12 = sphi %s545_s12, %s696_s12   ;;  %s517_s11 = sphi %s543_s11, %s695_s11   ;;  %s513_s10 = sphi %s541_s10, %s694_s10   ;;  %s509_s9 = sphi %s539_s9, %s693_s9  }
   0x4   : > { %s564_s15 = sadd.s32 1, %s521_s12   ;;  %s74_s16 = sadd.s32 1, %s517_s11 }
   0x5   : > { %s71_s17 = ssub.s32 %s521_s12, %s564_s15  ;;  %p84_p0 = scmp.ne.s32.totalorder %s517_s11, %s513_s10 }
   0x6   : > { %p72_p1 = scmp.eq.s32.totalorder %s71_s17, 0  ;;  %p85_p2 = scmp.eq.s32.totalorder %s560_s13, 1 }
   0x7   : > { %p90_p3 = scmp.ne.s32.totalorder %s513_s10, %s509_s9  ;;  %p91_p4 = scmp.eq.s32.totalorder %s386_s14, 1 }
   0x8   : > { %s575_s18 = scalar_select %p72_p1, %s517_s11, %s74_s16  }
   0x9   : > { %p579_p5 = por %p85_p2, %p84_p0  ;;  %p583_p6 = por %p91_p4, %p90_p3 }
   0xa   : > { %p389_p7 = scmp.ge.s32.totalorder %s521_s12, 1  ;;  %p127_p8 = scmp.lt.s32.totalorder %s521_s12, 3 }
   0xc   : > { %p128_p9 = pnand %p389_p7, %p127_p8 }
   0xd   : > { %s151_s21 = sand.u32 (!%p128_p9), 1, %s513_s10   ;;  %s390_s22 = sshll.u32 (!%p128_p9), %s560_s13, 2 }
   0xe   : > { %131 = sbr.rel (%p128_p9) target bundleno = 522 (0x20a), region = 28  ;;  %p154_p10 = scmp.lt.s32.totalorder (!%p128_p9), %s390_s22, 7 }
   0xf   : > { %s629_s30 = scalar_lea.vmem (!%p128_p9), [#allocation2], %s151_s21 }
  0x15   : > { %s698_s22 = smov (!%p154_p10, %s390_s22), 7  ;;  %vm245_vm4 = vcmask (!%p85_p2), 293888  }
  0x16   : > { %s391_s23 = sshll.u32 %s698_s22, 3 }
  0x17   : > { %s157_s26 = scalar_lea.vmem %s684_s0, %s391_s23  ;;  %s163_s29 = scalar_lea.vmem %s685_s1, %s391_s23 }
  0x18   : > { %v165_v0 = vld [vmem:[%s157_s26] sm:$0xff]  ;;  %v597_v1 = vld [vmem:[%s157_s26 + $0x8] sm:$0xff]  ;;  %v599_v2 = vld [vmem:[%s157_s26 + $0x10] sm:$0xff] }
  0x19   : > { %v601_v3 = vld [vmem:[%s157_s26 + $0x18] sm:$0xff]  ;;  %v185_v4 = vand.u32 2147483647, %v165_v0  ;;  %v186_v5 = vand.u32 2147483647, %v597_v1  ;;  %v169_v26 = vld [vmem:[%s163_s29] sm:$0xff] }
  0x1a   : > { %v187_v6 = vand.u32 2147483647, %v599_v2  ;;  %v188_v7 = vand.u32 2147483647, %v601_v3  ;;  %v170_v28 = vld [vmem:[%s163_s29 + $0x8] sm:$0xff]  ;;  %v171_v29 = vld [vmem:[%s163_s29 + $0x10] sm:$0xff]  ;;  %v177_v34 = vmul.f32 %v169_v26, %v165_v0 }
  0x1b   : > { %v189_v8 = vsub.f32 0.0, %v185_v4  ;;  %v190_v9 = vsub.f32 0.0, %v186_v5  ;;  %v172_v32 = vld [vmem:[%s163_s29 + $0x18] sm:$0xff]  ;;  %v173_v33 = vmax.f32 %v165_v0, 0.0  ;;  %v174_v37 = vmax.f32 %v597_v1, 0.0 }
  0x1c   : > { %v191_v10 = vsub.f32 0.0, %v187_v6  ;;  %v192_v11 = vsub.f32 0.0, %v188_v7  ;;  %v178_v38 = vmul.f32 %v170_v28, %v597_v1  ;;  %v175_v41 = vmax.f32 %v599_v2, 0.0 }
  0x1d   : > { %v193_v12 = vmul.f32 1.442695, %v189_v8  ;;  %v195_v13 = vmul.f32 1.442695, %v190_v9  ;;  %v179_v42 = vmul.f32 %v171_v29, %v599_v2  ;;  %v176_v44 = vmax.f32 %v601_v3, 0.0 }
  0x1e   : > { %v197_v14 = vmul.f32 1.442695, %v191_v10  ;;  %v199_v15 = vmul.f32 1.442695, %v192_v11  ;;  %v180_v45 = vmul.f32 %v172_v32, %v601_v3  ;;  %v181_v49 = vsub.f32 %v173_v33, %v177_v34 }
  0x1f   : > { %443 = vpow2.f32 %v193_v12  ;;  %v182_v54 = vsub.f32 %v174_v37, %v178_v38  ;;  %v183_v59 = vsub.f32 %v175_v41, %v179_v42 }
  0x20   : > { %445 = vpow2.f32 %v195_v13  ;;  %v184_v1 = vsub.f32 %v176_v44, %v180_v45 }
  0x21   : > { %447 = vpow2.f32 %v197_v14 }
  0x22   : > { %449 = vpow2.f32 %v199_v15 }
  0x29   : > { %v444_v16 = vpop.eup %443 }
  0x2a   : > { %v446_v17 = vpop.eup %445  ;;  %v201_v18 = vadd.f32 1.0, %v444_v16  ;;  %v204_v23 = vmul.f32 -0.5, %v444_v16  ;;  %v207_v35 = vand.u32 2147483647, %v444_v16 }
  0x2b   : > { %v448_v19 = vpop.eup %447  ;;  %v210_v20 = vadd.f32 1.0, %v446_v17  ;;  %v213_v24 = vmul.f32 -0.5, %v446_v17  ;;  %v216_v39 = vand.u32 2147483647, %v446_v17 }
  0x2c   : > { %v450_v21 = vpop.eup %449  ;;  %451 = vlog2.f32 %v201_v18  ;;  %v219_v22 = vadd.f32 1.0, %v448_v19  ;;  %v222_v27 = vmul.f32 -0.5, %v448_v19  ;;  %v205_v30 = vadd.f32 1.0, %v204_v23 }
  0x2d   : > { %453 = vlog2.f32 %v210_v20  ;;  %v228_v25 = vadd.f32 1.0, %v450_v21  ;;  %v231_v31 = vmul.f32 -0.5, %v450_v21  ;;  %v214_v36 = vadd.f32 1.0, %v213_v24 }
  0x2e   : > { %455 = vlog2.f32 %v219_v22  ;;  %v223_v40 = vadd.f32 1.0, %v222_v27  ;;  %v225_v43 = vand.u32 2147483647, %v448_v19  ;;  %v206_v46 = vmul.f32 %v444_v16, %v205_v30 }
  0x2f   : > { %457 = vlog2.f32 %v228_v25  ;;  %v232_v47 = vadd.f32 1.0, %v231_v31  ;;  %vm615_vm0 = vcmp.lt.f32.partialorder %v207_v35, 0.0004427343  ;;  %v215_v51 = vmul.f32 %v446_v17, %v214_v36 }
  0x30   : > { %v234_v52 = vand.u32 2147483647, %v450_v21  ;;  %vm619_vm1 = vcmp.lt.f32.partialorder %v216_v39, 0.0004427343  ;;  %v224_v57 = vmul.f32 %v448_v19, %v223_v40  ;;  %vm226_vm2 = vcmp.lt.f32.partialorder %v225_v43, 0.0004427343 }
  0x31   : > { %v233_v63 = vmul.f32 %v450_v21, %v232_v47 }
  0x32   : > { %vm235_vm3 = vcmp.lt.f32.partialorder %v234_v52, 0.0004427343 }
  0x36   : > { %v452_v48 = vpop.eup %451 }
  0x37   : > { %v454_v53 = vpop.eup %453  ;;  %v203_v55 = vmul.f32 0.6931472, %v452_v48  ;;  %244 = sbr.rel (%p85_p2) target bundleno = 274 (0x112), region = 32 }
  0x38   : > { %v456_v58 = vpop.eup %455  ;;  %v212_v60 = vmul.f32 0.6931472, %v454_v53 }
  0x39   : > { %v209_v61 = vsel %vm615_vm0, %v206_v46, %v203_v55  ;;  %v221_v62 = vmul.f32 0.6931472, %v456_v58  ;;  %v458_v0 = vpop.eup %457 }
  0x3a   : > { %v218_v2 = vsel %vm619_vm1, %v215_v51, %v212_v60  ;;  %v237_v3 = vadd.f32 %v209_v61, %v181_v49  ;;  %v230_v5 = vmul.f32 0.6931472, %v458_v0 }
  0x3b   : > { %v227_v4 = vsel %vm226_vm2, %v224_v57, %v221_v62  ;;  %v238_v6 = vadd.f32 %v218_v2, %v182_v54 }
  0x3c   : > { %v239_v7 = vadd.f32 %v227_v4, %v183_v59  ;;  %v236_v8 = vsel %vm235_vm3, %v233_v63, %v230_v5  ;;  %v246_v10 = vsel (!%p85_p2), %vm245_vm4, %v237_v3, 0.0 }
  0x3d   : > { %v240_v9 = vadd.f32 %v236_v8, %v184_v1  ;;  %v247_v11 = vsel (!%p85_p2), %vm245_vm4, %v238_v6, 0.0 }
  0x3e   : > { %v249_v12 = vsel %vm245_vm4, %v239_v7, 0.0  ;;  %v248_v13 = vadd.f32 %v247_v11, %v246_v10 }
  0x3f   : > { %v251_v14 = vsel %vm245_vm4, %v240_v9, 0.0 }
  0x40   : > { %v250_v15 = vadd.f32 %v249_v12, %v248_v13 }
  0x42   : > { %v252_v16 = vadd.f32 %v251_v14, %v250_v15 }
  0x44   : > { %253 = vadd.xlane.f32.xlu0 %v252_v16 }
  0xd1   : > { %v254_v17 = vpop.xlane.xlu0 %253 }
  0xd2   : > { %v255_v18 = vrot.slane %v254_v17, 4 }
  0xd4   : > { %v256_v19 = vadd.f32 %v255_v18, %v254_v17 }
  0xd6   : > { %v257_v20 = vrot.slane %v256_v19, 2 }
  0xd8   : > { %v258_v21 = vadd.f32 %v257_v20, %v256_v19 }
  0xda   : > { %v259_v22 = vrot.slane %v258_v21, 1 }
  0xdc   : > { %v260_v23 = vadd.f32 %v259_v22, %v258_v21 }
  0xde   : > { %400 = vpush %v260_v23 }
 0x10f   : > { %s401_s3 = spop %400 }
 0x110   : > { %v262_v24 = vstv %s401_s3 }
 0x111   : > { %263 = vst [vmem:[%s629_s30] sm:$0x1] %v262_v24 }
 0x112 PF: > { %p395_p11 = scmp.ne.s32.totalorder %s560_s13, 1 }
 0x113   : > { %v268_v25 = vlaneseq (!%p395_p11)  ;;  %s396_s4 = sshll.u32 (!%p395_p11), %s560_s13, 5  ;;  %vm287_vm5 = vcmask (!%p395_p11), 293888  }
 0x114   : > { %267 = sbr.rel (%p395_p11) target bundleno = 498 (0x1f2), region = 36  ;;  %v274_v26 = vstv (!%p395_p11), %s396_s4 }
 0x115   : > { %v269_v27 = vshrl.u32 (!%p395_p11), %v268_v25, 7 }
 0x117   : > { %v270_v28 = vadd.s32 (!%p395_p11), 8, %v269_v27  ;;  %v271_v29 = vadd.s32 (!%p395_p11), 16, %v269_v27  ;;  %v272_v30 = vadd.s32 (!%p395_p11), 24, %v269_v27  ;;  %v275_v31 = vadd.s32 (!%p395_p11), %v274_v26, %v269_v27 }
 0x119   : > { %v276_v32 = vadd.s32 (!%p395_p11), %v274_v26, %v270_v28  ;;  %v277_v33 = vadd.s32 (!%p395_p11), %v274_v26, %v271_v29  ;;  %v278_v34 = vadd.s32 (!%p395_p11), %v274_v26, %v272_v30  ;;  %vm279_vm6 = vcmp.lt.s32.totalorder (!%p395_p11), %v275_v31, 64 }
 0x11a   : > { %v283_v35 = vsel (!%p395_p11), %vm279_vm6, %v237_v3, 0.0 }
 0x11b   : > { %vm280_vm7 = vcmp.lt.s32.totalorder %v276_v32, 64  ;;  %vm281_vm8 = vcmp.lt.s32.totalorder %v277_v33, 64  ;;  %vm282_vm9 = vcmp.lt.s32.totalorder %v278_v34, 64  ;;  %v288_v36 = vsel %vm287_vm5, %v283_v35, 0.0 }
 0x11c   : > { %v284_v37 = vsel %vm280_vm7, %v238_v6, 0.0  ;;  %v285_v38 = vsel %vm281_vm8, %v239_v7, 0.0  ;;  %v286_v39 = vsel %vm282_vm9, %v240_v9, 0.0 }
 0x11d   : > { %v289_v40 = vsel %vm287_vm5, %v284_v37, 0.0  ;;  %v291_v41 = vsel %vm287_vm5, %v285_v38, 0.0  ;;  %v293_v43 = vsel %vm287_vm5, %v286_v39, 0.0 }
 0x11e   : > { %v290_v42 = vadd.f32 %v289_v40, %v288_v36 }
 0x120   : > { %v292_v44 = vadd.f32 %v291_v41, %v290_v42 }
 0x122   : > { %v294_v45 = vadd.f32 %v293_v43, %v292_v44 }
 0x124   : > { %295 = vadd.xlane.f32.xlu0 %v294_v45 }
 0x1b1   : > { %v296_v46 = vpop.xlane.xlu0 %295 }
 0x1b2   : > { %v297_v47 = vrot.slane %v296_v46, 4 }
 0x1b4   : > { %v298_v48 = vadd.f32 %v297_v47, %v296_v46 }
 0x1b6   : > { %v299_v49 = vrot.slane %v298_v48, 2 }
 0x1b8   : > { %v300_v50 = vadd.f32 %v299_v49, %v298_v48 }
 0x1ba   : > { %v301_v51 = vrot.slane %v300_v50, 1 }
 0x1bc   : > { %v302_v52 = vadd.f32 %v301_v51, %v300_v50 }
 0x1be   : > { %402 = vpush %v302_v52 }
 0x1ef   : > { %s403_s5 = spop %402 }
 0x1f0   : > { %v304_v53 = vstv %s403_s5 }
 0x1f1   : > { %305 = vst [vmem:[%s629_s30] sm:$0x1] %v304_v53 }
 0x1f2 PF: > { %s397_s6 = sshll.u32 %s560_s13, 4  ;;  %s319_s16 = sshll.u32 %s629_s30, 4  ;;  %s320_s16 = int_to_ptr.vmem [resolvable:$true] %s319_s16 }
 0x1f3   : > { %s645_s14 = scalar_lea.hbm %s686_s2, %s397_s6  ;;  %s307_s17 = scalar_lea.sflag [#allocation3], %s151_s21 }
 0x1f4   : > { %s459_s22 = scalar_lea.vmem %s320_s16, 16  ;;  %s523_s23 = smov [#allocation2]  }
 0x1f5   : > { %p460_p12 = scmp.ne.s32.totalorder %s320_s16, %s459_s22  ;;  %s463_s24 = sshll.u32 %s523_s23, 4  ;;  %s464_s24 = int_to_ptr.vmem [resolvable:$false] %s463_s24 }
 0x1f6   : > { %s465_s25 = scalar_lea.vmem %s464_s24, 32  ;;  %p466_p1 = scmp.lt.s32.totalorder %s320_s16, %s464_s24 }
 0x1f7   : > { %p461_p13 = pnand %p460_p12, %p579_p5  ;;  %p467_p2 = scmp.lt.s32.totalorder %s465_s25, %s459_s22 }
 0x1f9   : > { %p462_p0 = pneg %p461_p13  ;;  %p468_p3 = por %p467_p2, %p466_p1 }
 0x1fb   : > { %p469_p4 = pnand %p468_p3, %p462_p0 }
 0x1fd   : > { %472 = shalt.err (!%p469_p4)
}
 0x1fe   : > { %s473_s13 = scalar_lea.hbm %s645_s14, 16  ;;  %s477_s27 = scalar_lea.hbm %s686_s2, 32 }
 0x1ff   : > { %p474_p7 = scmp.ne.s32.totalorder %s645_s14, %s473_s13  ;;  %p478_p10 = scmp.lt.u32.totalorder %s645_s14, %s686_s2 }
 0x200   : > { %p479_p11 = scmp.lt.u32.totalorder %s477_s27, %s473_s13  ;;  %p481_p13 = scmp.lt.u32.totalorder %s473_s13, %s645_s14 }
 0x201   : > { %p475_p8 = pnand %p474_p7, %p579_p5 }
 0x202   : > { %p480_p12 = por %p479_p11, %p478_p10 }
 0x203   : > { %p476_p9 = pneg %p475_p8 }
 0x204   : > { %p482_p0 = por %p481_p13, %p480_p12 }
 0x206   : > { %p483_p1 = pnand %p482_p0, %p476_p9 }
 0x208   : > { %486 = shalt.err (!%p483_p1)
}
 0x209   : > { %404 = dma.vmem_to_hbm [thread:$0]  (%p579_p5), %s320_s16, 16, %s645_s14, %s307_s17  }
 0x20a PF: > { %p410_p2 = scmp.ge.s32.totalorder %s521_s12, 2  ;;  %s331_s30 = sand.u32 1, %s509_s9  }
 0x20b   : > { %s332_s3 = scalar_lea.sflag [#allocation3], %s331_s30 }
 0x20c   : > { %p407_p3 = pnand %p410_p2, %p583_p6 }
 0x20e   : > { %504 = dma.done.wait (!%p407_p3), %s332_s3, 16  }
 0x20f   : > { %506 = vsyncadd (!%p407_p3), %s332_s3, 4294967280  ;;  %p12_p4 = scmp.ge.s32.totalorder %s564_s15, 4   ;;  %s693_s9 = smov %s513_s10 }
 0x210   : > { %s694_s10 = smov %s517_s11  ;;  %s695_s11 = smov %s575_s18 }
 0x211   : > { %s696_s12 = smov %s564_s15  ;;  %14 = sbr.rel (!%p12_p4) target bundleno = 3 (0x3), region = 74 }
 0x218   :  { %336 = vsyncpa [#allocation3], 1 }
 0x219   :  { %338 = vsyncpa [#allocation3 + $0x1], 1 }

</bundles_post_ra>
